<compile_context>
chip_gen: v5e
topology: v5e:2x2
jax: 0.10.0
libtpu: 0.0.40
codegen_flags: <defaults>
</compile_context>

<pallas_src>
import jax
import jax.numpy as jnp
from jax.experimental import pallas as pl
from jax.experimental.pallas import tpu as pltpu

HP = 128                     # padded hidden / input width (lane-dense)
MXU_DTYPE = jnp.bfloat16     # MXU operand dtype; accumulation stays f32
BIG = 100.0                  # sigmoid(BIG) == 1.0 exactly in f32 (constant-one lane trick)


# ----------------------------- Pallas kernel --------------------------------
def circuit_rank_kernel(a_ref, x_ref, pa_ref, wmat_ref, wvec_ref, out_ref):
    """One (data0, data1) comparison per grid step.

    a_ref   : [2N, 2N]    block-diag D^-1/2 (A+I) D^-1/2 of the fused pair (MXU dtype)
    x_ref   : [2N, HP]    stacked, zero-padded node features (MXU dtype)
    pa_ref  : [2, G, 2N]  precomputed (mean-pool @ A_norm); slot 0 -> data0, slot 1 -> data1
    wmat_ref: [4*HP, HP]  packed {W1, W2, Wc1a, Wc1b} (MXU dtype)
    wvec_ref: [8, HP] f32 rows {b1, bc1'(+BIG at lane H), wc2_row(+bc2 at lane H), 0..}
    out_ref : [G, 1] f32  probabilities
    """
    mxu = a_ref.dtype

    # Static views into the packed weight buffer (zero runtime cost).
    w1 = wmat_ref[0 * HP:1 * HP, :]
    w2 = wmat_ref[1 * HP:2 * HP, :]
    wc1a = wmat_ref[2 * HP:3 * HP, :]
    wc1b = wmat_ref[3 * HP:4 * HP, :]
    b1 = wvec_ref[0:1, :]
    bc1 = wvec_ref[1:2, :]     # b2 folded in; lane H holds +BIG -> constant-one feature
    wc2 = wvec_ref[2:3, :]     # lane H holds bc2 -> final bias folded into the reduce

    # GCNConv1: A_norm @ (X @ W1) + b1   (both graphs at once via block-diag A)
    h = jnp.dot(x_ref[...], w1, preferred_element_type=jnp.float32)
    h = jnp.dot(a_ref[...], h.astype(mxu), preferred_element_type=jnp.float32) + b1
    # TODO(synk): nn.Dropout(p=0.2) is identity at inference; not applied here.

    # GCNConv2 + global_mean_pool fused:
    #   f_side = P @ (A_norm @ (H @ W2) + b2) = (P @ A_norm) @ (H @ W2) + b2
    # (PA precomputed outside; b2 folded into bc1 at pack time.)
    g = jnp.dot(h.astype(mxu), w2, preferred_element_type=jnp.float32).astype(mxu)
    f0 = jnp.dot(pa_ref[0], g, preferred_element_type=jnp.float32)   # [G, HP]
    f1 = jnp.dot(pa_ref[1], g, preferred_element_type=jnp.float32)   # [G, HP]

    # compare Linear(2H -> H) on concat([f0, f1], axis=1) as a split matmul
    # (avoids an in-kernel concat), then Sigmoid (f32 VPU/EUP).
    hc = (jnp.dot(f0.astype(mxu), wc1a, preferred_element_type=jnp.float32)
          + jnp.dot(f1.astype(mxu), wc1b, preferred_element_type=jnp.float32)
          + bc1)
    hc = jax.nn.sigmoid(hc)                  # [G, HP]; lane H saturates to exactly 1.0

    # compare Linear(H -> 1): broadcast-multiply + lane reduce instead of an N=1 MXU
    # matmul (frees the MXU; bc2 rides along on the constant-one lane).
    logits = jnp.sum(hc * wc2, axis=-1, keepdims=True)   # [G, 1]
    out_ref[...] = jax.nn.sigmoid(logits)                # outer self.activate


# ------------------------------- pallas_call wrapper -------------------------
def circuit_rank_pairs(wmat, wvec, a, x, pa):
    """Run B independent (data0, data1) comparisons in one pallas_call.

    a: [B, 2N, 2N], x: [B, 2N, HP], pa: [B, 2, G, 2N]  ->  [B, G] probabilities.
    """
    B, twoN, _ = a.shape
    G = pa.shape[2]
    out = pl.pallas_call(
        circuit_rank_kernel,
        out_shape=jax.ShapeDtypeStruct((B, G, 1), jnp.float32),
        grid=(B,),
        in_specs=[
            pl.BlockSpec((None, twoN, twoN), lambda b: (b, 0, 0)),
            pl.BlockSpec((None, twoN, HP), lambda b: (b, 0, 0)),
            pl.BlockSpec((None, 2, G, twoN), lambda b: (b, 0, 0, 0)),
            pl.BlockSpec((4 * HP, HP), lambda b: (0, 0)),   # weights stay resident
            pl.BlockSpec((8, HP), lambda b: (0, 0)),
        ],
        out_specs=pl.BlockSpec((None, G, 1), lambda b: (b, 0, 0)),
        compiler_params=pltpu.CompilerParams(
            dimension_semantics=("parallel",)),  # shard pairs across TCs (v7x megacore)
    )(a, x, pa, wmat, wvec)
    return out[..., 0]   # [B, G]


# ------------------------------- JAX glue ------------------------------------
def gcn_norm_adj(edge_index, num_nodes):
    """Dense D^-1/2 (A + I) D^-1/2 from edge_index [2, E] (messages src->dst)."""
    src, dst = edge_index[0], edge_index[1]
    adj = jnp.zeros((num_nodes, num_nodes), jnp.float32).at[dst, src].add(1.0)
    adj = adj + jnp.eye(num_nodes, dtype=jnp.float32)
    deg = adj.sum(axis=1)
    dinv = 1.0 / jnp.sqrt(jnp.maximum(deg, 1.0))
    return dinv[:, None] * adj * dinv[None, :]


def mean_pool_matrix(batch, num_graphs):
    """[G, N] matrix with 1/|graph g| at (g, n) for node n in graph g."""
    onehot = (batch[None, :] == jnp.arange(num_graphs)[:, None]).astype(jnp.float32)
    counts = onehot.sum(axis=1, keepdims=True)
    return onehot / jnp.maximum(counts, 1.0)


def fuse_pair(a0, x0, p0, a1, x1, p1):
    """Fuse (data0, data1): block-diag adjacency, stacked padded features, and the
    precomputed pool-after-propagate slabs PA = P @ A_norm (per side, f32, exact)."""
    n0, n1 = a0.shape[0], a1.shape[0]
    g = p0.shape[0]
    din = x0.shape[1]
    a = jnp.zeros((n0 + n1, n0 + n1), jnp.float32)
    a = a.at[:n0, :n0].set(a0).at[n0:, n0:].set(a1)
    x = jnp.zeros((n0 + n1, HP), jnp.float32)
    x = x.at[:n0, :din].set(x0).at[n0:, :din].set(x1)
    pa = jnp.zeros((2, g, n0 + n1), jnp.float32)
    pa = pa.at[0, :, :n0].set(p0 @ a0).at[1, :, n0:].set(p1 @ a1)
    return a.astype(MXU_DTYPE), x.astype(MXU_DTYPE), pa.astype(MXU_DTYPE)


def pack_params(params):
    """Pack all weights/biases into one [4*HP,HP] MXU buffer + one [8,HP] f32 buffer."""
    h = params["w1"].shape[1]
    assert h < HP, "need one free padded lane for the constant-one bias trick"

    def pad(w):
        buf = jnp.zeros((HP, HP), jnp.float32)
        return buf.at[:w.shape[0], :w.shape[1]].set(w)

    wc1a = params["wc1"][:h]
    wc1b = params["wc1"][h:]
    wmat = jnp.concatenate(
        [pad(params["w1"]), pad(params["w2"]), pad(wc1a), pad(wc1b)],
        axis=0).astype(MXU_DTYPE)

    # Fold b2 (added before pooling in the reference, which commutes with mean-pool)
    # into the compare bias, exactly, in f32:  bc1' = bc1 + b2 @ (Wc1a + Wc1b).
    bc1_eff = params["bc1"] + params["b2"] @ (wc1a + wc1b)

    wvec = jnp.zeros((8, HP), jnp.float32)
    wvec = wvec.at[0, :h].set(params["b1"])
    # lane h of bc1' = BIG -> sigmoid saturates to exactly 1.0 (constant-one feature)
    wvec = wvec.at[1, :h].set(bc1_eff).at[1, h].set(BIG)
    # lane h of the wc2 row = bc2 -> final bias folded into the lane reduce
    wvec = wvec.at[2, :h].set(params["wc2"][:, 0]).at[2, h].set(params["bc2"])
    return wmat, wvec


def circuit_rank_net(params, x0, ei0, batch0, x1, ei1, batch1, num_graphs):
    """Forward of CircuitRankNet for one (data0, data1) pair -> [G] probabilities."""
    n0, n1 = x0.shape[0], x1.shape[0]
    a0 = gcn_norm_adj(ei0, n0)
    a1 = gcn_norm_adj(ei1, n1)
    p0 = mean_pool_matrix(batch0, num_graphs)
    p1 = mean_pool_matrix(batch1, num_graphs)
    a, x, pa = fuse_pair(a0, x0, p0, a1, x1, p1)
    wmat, wvec = pack_params(params)
    return circuit_rank_pairs(wmat, wvec, a[None], x[None], pa[None])[0]


def reference_forward(params, a0, x0, p0, a1, x1, p1):
    """Pure-JAX f32 reference with the exact CircuitRankNet forward semantics."""
    def emb(a, x, p):
        h = a @ (x @ params["w1"]) + params["b1"]
        h = a @ (h @ params["w2"]) + params["b2"]
        return p @ h
    f0, f1 = emb(a0, x0, p0), emb(a1, x1, p1)
    cat = jnp.concatenate([f0, f1], axis=1)
    hid = jax.nn.sigmoid(cat @ params["wc1"] + params["bc1"])
    logits = hid @ params["wc2"] + params["bc2"]
    return jax.nn.sigmoid(logits)[:, 0]


def init_params(key, dim_input, dim_hidden):
    ks = jax.random.split(key, 8)
    s = 0.1
    return {
        "w1": s * jax.random.normal(ks[0], (dim_input, dim_hidden), jnp.float32),
        "b1": s * jax.random.normal(ks[1], (dim_hidden,), jnp.float32),
        "w2": s * jax.random.normal(ks[2], (dim_hidden, dim_hidden), jnp.float32),
        "b2": s * jax.random.normal(ks[3], (dim_hidden,), jnp.float32),
        "wc1": s * jax.random.normal(ks[4], (2 * dim_hidden, dim_hidden), jnp.float32),
        "bc1": s * jax.random.normal(ks[5], (dim_hidden,), jnp.float32),
        "wc2": s * jax.random.normal(ks[6], (dim_hidden, 1), jnp.float32),
        "bc2": s * jax.random.normal(ks[7], (1,), jnp.float32)[0],
    }


def make_graph(key, num_nodes, dim_input, num_graphs):
    """Synthetic Data-like graph: node features, ring edges per sub-graph, batch vec."""
    x = jax.random.normal(key, (num_nodes, dim_input), jnp.float32)
    per = num_nodes // num_graphs
    src, dst = [], []
    for g in range(num_graphs):
        base = g * per
        for i in range(per):
            u, v = base + i, base + (i + 1) % per
            src += [u, v]
            dst += [v, u]
    edge_index = jnp.array([src, dst], dtype=jnp.int32)
    batch = jnp.repeat(jnp.arange(num_graphs, dtype=jnp.int32), per)
    return x, edge_index, batch


if __name__ == "__main__":
    dim_input, dim_hidden = 16, 32
    num_nodes, num_graphs = 16, 2     # each Data is a batch of 2 graphs x 8 nodes

    key = jax.random.PRNGKey(0)
    kp, k0, k1, k2, k3 = jax.random.split(key, 5)
    params = init_params(kp, dim_input, dim_hidden)

    x0, ei0, batch0 = make_graph(k0, num_nodes, dim_input, num_graphs)
    x1, ei1, batch1 = make_graph(k1, num_nodes, dim_input, num_graphs)

    # Single (data0, data1) forward — matches CircuitRankNet.forward semantics.
    prob = circuit_rank_net(params, x0, ei0, batch0, x1, ei1, batch1, num_graphs)
    jax.block_until_ready(prob)
    assert prob.shape == (num_graphs,)

    # Numerical check against a pure-JAX f32 reference (kernel uses bf16 MXU operands).
    a0 = gcn_norm_adj(ei0, num_nodes)
    a1 = gcn_norm_adj(ei1, num_nodes)
    p0 = mean_pool_matrix(batch0, num_graphs)
    p1 = mean_pool_matrix(batch1, num_graphs)
    ref = reference_forward(params, a0, x0, p0, a1, x1, p1)
    assert jnp.allclose(prob, ref, atol=5e-2), (prob, ref)

    # Batched pairs: B independent comparisons in one pallas_call, grid marked
    # "parallel" so they shard across TensorCores (v7x) and amortize launch cost.
    x2, ei2, batch2 = make_graph(k2, num_nodes, dim_input, num_graphs)
    x3, ei3, batch3 = make_graph(k3, num_nodes, dim_input, num_graphs)
    a2, a3 = gcn_norm_adj(ei2, num_nodes), gcn_norm_adj(ei3, num_nodes)
    p2, p3 = mean_pool_matrix(batch2, num_graphs), mean_pool_matrix(batch3, num_graphs)
    fa0, fx0, fp0 = fuse_pair(a0, x0, p0, a1, x1, p1)
    fa1, fx1, fp1 = fuse_pair(a2, x2, p2, a3, x3, p3)
    wmat, wvec = pack_params(params)
    probs_b = circuit_rank_pairs(
        wmat, wvec,
        jnp.stack([fa0, fa1]), jnp.stack([fx0, fx1]), jnp.stack([fp0, fp1]))
    jax.block_until_ready(probs_b)
    assert probs_b.shape == (2, num_graphs)
    assert jnp.allclose(probs_b[0], prob, atol=1e-5)

    print("KERNEL_OK")
</pallas_src>

<mosaic_0001>
module attributes {stable_mosaic.version = 11 : i64} {
  func.func @circuit_rank_kernel(%arg0: i32, %arg1: memref<1x32x32xbf16, #tpu.memory_space<vmem>>, %arg2: memref<1x32x128xbf16, #tpu.memory_space<vmem>>, %arg3: memref<1x2x2x32xbf16, #tpu.memory_space<vmem>>, %arg4: memref<512x128xbf16, #tpu.memory_space<vmem>>, %arg5: memref<8x128xf32, #tpu.memory_space<vmem>>, %arg6: memref<1x2x1xf32, #tpu.memory_space<vmem>>) attributes {dimension_semantics = [#tpu.dimension_semantics<parallel>], iteration_bounds = array<i64: 1>, scalar_prefetch = 0 : i64, scratch_operands = 0 : i64, tpu.core_type = #tpu.core_type<tc>, window_params = [{transform_indices = @transform_0, window_bounds = array<i64: 1, 32, 32>}, {transform_indices = @transform_1, window_bounds = array<i64: 1, 32, 128>}, {transform_indices = @transform_2, window_bounds = array<i64: 1, 2, 2, 32>}, {pipeline_mode = #tpu.pipeline_mode<synchronous>, transform_indices = @transform_3, window_bounds = array<i64: 512, 128>}, {pipeline_mode = #tpu.pipeline_mode<synchronous>, transform_indices = @transform_4, window_bounds = array<i64: 8, 128>}, {transform_indices = @transform_5, window_bounds = array<i64: 1, 2, 1>}]} {
    %c0 = arith.constant 0 : index
    %c0_0 = arith.constant 0 : index
    %0 = vector.load %arg4[%c0, %c0_0] : memref<512x128xbf16, #tpu.memory_space<vmem>>, vector<128x128xbf16>
    %c128 = arith.constant 128 : index
    %c0_1 = arith.constant 0 : index
    %1 = vector.load %arg4[%c128, %c0_1] : memref<512x128xbf16, #tpu.memory_space<vmem>>, vector<128x128xbf16>
    %c256 = arith.constant 256 : index
    %c0_2 = arith.constant 0 : index
    %2 = vector.load %arg4[%c256, %c0_2] : memref<512x128xbf16, #tpu.memory_space<vmem>>, vector<128x128xbf16>
    %c384 = arith.constant 384 : index
    %c0_3 = arith.constant 0 : index
    %3 = vector.load %arg4[%c384, %c0_3] : memref<512x128xbf16, #tpu.memory_space<vmem>>, vector<128x128xbf16>
    %c0_4 = arith.constant 0 : index
    %c0_5 = arith.constant 0 : index
    %4 = vector.load %arg5[%c0_4, %c0_5] : memref<8x128xf32, #tpu.memory_space<vmem>>, vector<1x128xf32>
    %c1 = arith.constant 1 : index
    %c0_6 = arith.constant 0 : index
    %5 = vector.load %arg5[%c1, %c0_6] : memref<8x128xf32, #tpu.memory_space<vmem>>, vector<1x128xf32>
    %c2 = arith.constant 2 : index
    %c0_7 = arith.constant 0 : index
    %6 = vector.load %arg5[%c2, %c0_7] : memref<8x128xf32, #tpu.memory_space<vmem>>, vector<1x128xf32>
    %c0_8 = arith.constant 0 : index
    %c0_9 = arith.constant 0 : index
    %c0_10 = arith.constant 0 : index
    %7 = vector.load %arg2[%c0_8, %c0_9, %c0_10] : memref<1x32x128xbf16, #tpu.memory_space<vmem>>, vector<1x32x128xbf16>
    %8 = vector.shape_cast %7 : vector<1x32x128xbf16> to vector<32x128xbf16>
    %cst = arith.constant dense<0.000000e+00> : vector<32x128xf32>
    %9 = tpu.matmul %8, %0, %cst {dimension_numbers = #tpu.dot_dimension_numbers<[1], [0], [0], [1], [0, 0, 1, 1], [], []>} : vector<32x128xbf16>, vector<128x128xbf16>, vector<32x128xf32> -> vector<32x128xf32>
    %c0_11 = arith.constant 0 : index
    %c0_12 = arith.constant 0 : index
    %c0_13 = arith.constant 0 : index
    %10 = vector.load %arg1[%c0_11, %c0_12, %c0_13] : memref<1x32x32xbf16, #tpu.memory_space<vmem>>, vector<1x32x32xbf16>
    %11 = vector.shape_cast %10 : vector<1x32x32xbf16> to vector<32x32xbf16>
    %12 = arith.truncf %9 : vector<32x128xf32> to vector<32x128xbf16>
    %cst_14 = arith.constant dense<0.000000e+00> : vector<32x128xf32>
    %13 = tpu.matmul %11, %12, %cst_14 {dimension_numbers = #tpu.dot_dimension_numbers<[1], [0], [0], [1], [0, 0, 1, 1], [], []>} : vector<32x32xbf16>, vector<32x128xbf16>, vector<32x128xf32> -> vector<32x128xf32>
    %14 = vector.broadcast %4 : vector<1x128xf32> to vector<32x128xf32>
    %15 = arith.addf %13, %14 : vector<32x128xf32>
    %16 = arith.truncf %15 : vector<32x128xf32> to vector<32x128xbf16>
    %cst_15 = arith.constant dense<0.000000e+00> : vector<32x128xf32>
    %17 = tpu.matmul %16, %1, %cst_15 {dimension_numbers = #tpu.dot_dimension_numbers<[1], [0], [0], [1], [0, 0, 1, 1], [], []>} : vector<32x128xbf16>, vector<128x128xbf16>, vector<32x128xf32> -> vector<32x128xf32>
    %18 = arith.truncf %17 : vector<32x128xf32> to vector<32x128xbf16>
    %c0_16 = arith.constant 0 : index
    %c0_17 = arith.constant 0 : index
    %c0_18 = arith.constant 0 : index
    %c0_19 = arith.constant 0 : index
    %19 = vector.load %arg3[%c0_16, %c0_17, %c0_18, %c0_19] : memref<1x2x2x32xbf16, #tpu.memory_space<vmem>>, vector<1x1x2x32xbf16>
    %20 = vector.shape_cast %19 : vector<1x1x2x32xbf16> to vector<2x32xbf16>
    %cst_20 = arith.constant dense<0.000000e+00> : vector<2x128xf32>
    %21 = tpu.matmul %20, %18, %cst_20 {dimension_numbers = #tpu.dot_dimension_numbers<[1], [0], [0], [1], [0, 0, 1, 1], [], []>} : vector<2x32xbf16>, vector<32x128xbf16>, vector<2x128xf32> -> vector<2x128xf32>
    %c0_21 = arith.constant 0 : index
    %c1_22 = arith.constant 1 : index
    %c0_23 = arith.constant 0 : index
    %c0_24 = arith.constant 0 : index
    %22 = vector.load %arg3[%c0_21, %c1_22, %c0_23, %c0_24] : memref<1x2x2x32xbf16, #tpu.memory_space<vmem>>, vector<1x1x2x32xbf16>
    %23 = vector.shape_cast %22 : vector<1x1x2x32xbf16> to vector<2x32xbf16>
    %cst_25 = arith.constant dense<0.000000e+00> : vector<2x128xf32>
    %24 = tpu.matmul %23, %18, %cst_25 {dimension_numbers = #tpu.dot_dimension_numbers<[1], [0], [0], [1], [0, 0, 1, 1], [], []>} : vector<2x32xbf16>, vector<32x128xbf16>, vector<2x128xf32> -> vector<2x128xf32>
    %25 = arith.truncf %21 : vector<2x128xf32> to vector<2x128xbf16>
    %cst_26 = arith.constant dense<0.000000e+00> : vector<2x128xf32>
    %26 = tpu.matmul %25, %2, %cst_26 {dimension_numbers = #tpu.dot_dimension_numbers<[1], [0], [0], [1], [0, 0, 1, 1], [], []>} : vector<2x128xbf16>, vector<128x128xbf16>, vector<2x128xf32> -> vector<2x128xf32>
    %27 = arith.truncf %24 : vector<2x128xf32> to vector<2x128xbf16>
    %cst_27 = arith.constant dense<0.000000e+00> : vector<2x128xf32>
    %28 = tpu.matmul %27, %3, %cst_27 {dimension_numbers = #tpu.dot_dimension_numbers<[1], [0], [0], [1], [0, 0, 1, 1], [], []>} : vector<2x128xbf16>, vector<128x128xbf16>, vector<2x128xf32> -> vector<2x128xf32>
    %29 = arith.addf %26, %28 : vector<2x128xf32>
    %30 = vector.broadcast %5 : vector<1x128xf32> to vector<2x128xf32>
    %31 = arith.addf %29, %30 : vector<2x128xf32>
    %32 = arith.negf %31 : vector<2x128xf32>
    %33 = math.exp %32 : vector<2x128xf32>
    %cst_28 = arith.constant 1.000000e+00 : f32
    %34 = vector.broadcast %cst_28 : f32 to vector<2x128xf32>
    %35 = arith.addf %34, %33 : vector<2x128xf32>
    %36 = arith.divf %34, %35 : vector<2x128xf32>
    %37 = vector.broadcast %6 : vector<1x128xf32> to vector<2x128xf32>
    %38 = arith.mulf %36, %37 : vector<2x128xf32>
    %cst_29 = arith.constant dense<0.000000e+00> : vector<2xf32>
    %39 = vector.multi_reduction <add>, %38, %cst_29 [1] : vector<2x128xf32> to vector<2xf32>
    %40 = vector.shape_cast %39 : vector<2xf32> to vector<2x1xf32>
    %41 = arith.negf %40 : vector<2x1xf32>
    %42 = math.exp %41 : vector<2x1xf32>
    %cst_30 = arith.constant 1.000000e+00 : f32
    %43 = vector.broadcast %cst_30 : f32 to vector<2x1xf32>
    %44 = arith.addf %43, %42 : vector<2x1xf32>
    %45 = arith.divf %43, %44 : vector<2x1xf32>
    %c0_31 = arith.constant 0 : index
    %c0_32 = arith.constant 0 : index
    %c0_33 = arith.constant 0 : index
    %46 = vector.load %arg6[%c0_31, %c0_32, %c0_33] : memref<1x2x1xf32, #tpu.memory_space<vmem>>, vector<1x2x1xf32>
    %47 = vector.shape_cast %46 : vector<1x2x1xf32> to vector<2x1xf32>
    %48 = vector.shape_cast %45 : vector<2x1xf32> to vector<1x2x1xf32>
    tpu.vector_store %arg6[%c0_31, %c0_32, %c0_33], %48 {strides = array<i32>} : memref<1x2x1xf32, #tpu.memory_space<vmem>>, vector<1x2x1xf32>,
    return
  }
  func.func @transform_0(%arg0: i32) -> (i32, i32, i32) {
    %c0_i32 = arith.constant 0 : i32
    %c0_i32_0 = arith.constant 0 : i32
    %c0_i32_1 = arith.constant 0 : i32
    return %arg0, %c0_i32, %c0_i32_0 : i32, i32, i32
  }
  func.func @transform_1(%arg0: i32) -> (i32, i32, i32) {
    %c0_i32 = arith.constant 0 : i32
    %c0_i32_0 = arith.constant 0 : i32
    %c0_i32_1 = arith.constant 0 : i32
    return %arg0, %c0_i32, %c0_i32_0 : i32, i32, i32
  }
  func.func @transform_2(%arg0: i32) -> (i32, i32, i32, i32) {
    %c0_i32 = arith.constant 0 : i32
    %c0_i32_0 = arith.constant 0 : i32
    %c0_i32_1 = arith.constant 0 : i32
    %c0_i32_2 = arith.constant 0 : i32
    return %arg0, %c0_i32, %c0_i32_0, %c0_i32_1 : i32, i32, i32, i32
  }
  func.func @transform_3(%arg0: i32) -> (i32, i32) {
    %c0_i32 = arith.constant 0 : i32
    %c0_i32_0 = arith.constant 0 : i32
    %c0_i32_1 = arith.constant 0 : i32
    return %c0_i32, %c0_i32_0 : i32, i32
  }
  func.func @transform_4(%arg0: i32) -> (i32, i32) {
    %c0_i32 = arith.constant 0 : i32
    %c0_i32_0 = arith.constant 0 : i32
    %c0_i32_1 = arith.constant 0 : i32
    return %c0_i32, %c0_i32_0 : i32, i32
  }
  func.func @transform_5(%arg0: i32) -> (i32, i32, i32) {
    %c0_i32 = arith.constant 0 : i32
    %c0_i32_0 = arith.constant 0 : i32
    %c0_i32_1 = arith.constant 0 : i32
    return %arg0, %c0_i32, %c0_i32_0 : i32, i32, i32
  }
}

</mosaic_0001>

<bundles_post_ra>
// kernel: tpu_custom_call.1
= control target key start
LH: loop header
LB: loop body
LE: loop exit
PB: predicated region body
PF: predicated region fallthrough
CT: control target
= control target key end

     0   :  { %10 = vsyncpa [#allocation3], 0  ;;  %s968_s0 = inlined_call_operand.hbm [shape: bf16[1,32,32], index: 0, kind: input, shape index: {}]   ;;  %s969_s1 = inlined_call_operand.hbm [shape: bf16[1,32,128], index: 1, kind: input, shape index: {}]   ;;  %s970_s2 = inlined_call_operand.hbm [shape: bf16[1,2,2,32], index: 2, kind: input, shape index: {}]   ;;  %s971_s3 = inlined_call_operand.hbm [shape: bf16[512,128], index: 3, kind: input, shape index: {}]   ;;  %s972_s4 = inlined_call_operand.hbm [shape: f32[8,128], index: 4, kind: input, shape index: {}]   ;;  %s973_s5 = inlined_call_operand.vmem [shape: f32[1,2,1], index: 5, kind: output, shape index: {}]  }
   0x1   :  { %11 = vsyncpa [#allocation5], 0 }
   0x2   :  { %12 = vsyncpa [#allocation8], 0  ;;  %s30_s20 = sshll.u32 %s969_s1, 4  ;;  %s907_s21 = smov [#allocation4]   ;;  %s31_s20 = int_to_ptr.hbm [resolvable:$true] %s30_s20 }
   0x3   :  { %s32_s22 = sshll.u32 %s907_s21, 4  ;;  %s56_s25 = sshll.u32 %s971_s3, 4  ;;  %s33_s22 = int_to_ptr.vmem [resolvable:$true] %s32_s22  ;;  %s57_s25 = int_to_ptr.hbm [resolvable:$true] %s56_s25 }
   0x4   :  { %s908_s26 = smov 64   ;;  %s909_s27 = smov 4  }
   0x5   :  { %38 = dma.hbm_to_vmem [thread:$0]  %s31_s20, 256, %s33_s22, [#allocation5], %s908_s26, %s908_s26, %s909_s27  }
   0x6   :  { %s910_s28 = smov [#allocation7]   ;;  %s17_s7 = sshll.u32 %s968_s0, 4  ;;  %s18_s7 = int_to_ptr.hbm [resolvable:$true] %s17_s7 }
   0x7   :  { %s58_s29 = sshll.u32 %s910_s28, 4  ;;  %s43_s9 = sshll.u32 %s970_s2, 4  ;;  %s59_s29 = int_to_ptr.vmem [resolvable:$true] %s58_s29  ;;  %s44_s9 = int_to_ptr.hbm [resolvable:$true] %s43_s9 }
   0x8   :  { %64 = dma.hbm_to_vmem [thread:$0]  %s57_s25, 4096, %s59_s29, [#allocation8], %s908_s26, %s908_s26, %s909_s27  }
   0x9   :  { %s911_s10 = smov [#allocation2]   ;;  %s912_s3 = smov [#allocation6]  }
   0xa   :  { %s19_s11 = sshll.u32 %s911_s10, 4  ;;  %s45_s12 = sshll.u32 %s912_s3, 4  ;;  %s20_s11 = int_to_ptr.vmem [resolvable:$true] %s19_s11  ;;  %s46_s12 = int_to_ptr.vmem [resolvable:$true] %s45_s12 }
   0xb   :  { %25 = dma.hbm_to_vmem [thread:$0]  %s18_s7, 256, %s20_s11, [#allocation3], %s908_s26, %s908_s26, %s909_s27  }
   0xc   :  { %s913_s13 = smov 16   ;;  %s914_s14 = smov 1  }
   0xd   :  { %51 = dma.hbm_to_vmem [thread:$0]  %s44_s9, 32, %s46_s12, [#allocation5], %s913_s13, %s913_s13, %s914_s14  }
   0xe   :  { %s70_s16 = sshll.u32 %s972_s4, 4  ;;  %s915_s17 = smov [#allocation9]   ;;  %s71_s16 = int_to_ptr.hbm [resolvable:$true] %s70_s16 }
   0xf   :  { %s72_s18 = sshll.u32 %s915_s17, 4  ;;  %s73_s18 = int_to_ptr.vmem [resolvable:$true] %s72_s18 }
  0x10   :  { %75 = dma.hbm_to_vmem [thread:$0]  %s71_s16, 128, %s73_s18, [#allocation8]  }
  0x11   :  { %901 = dma.done.wait [#allocation3], 256  }
  0x12   :  { %902 = vsyncadd [#allocation3], 4294967040 }
  0x13   :  { %903 = dma.done.wait [#allocation5], 288  }
  0x14   :  { %904 = vsyncadd [#allocation5], 4294967008 }
  0x15   :  { %905 = dma.done.wait [#allocation8], 4224  }
  0x16   :  { %906 = vsyncadd [#allocation8], 4294963072  ;;  %v732_v0 = vld [vmem:[#allocation7 + $0x38] sm:$0xff]  ;;  %v731_v1 = vld [vmem:[#allocation7 + $0x30] sm:$0xff]  ;;  %vm264_vm0 = vcmask 261120   ;;  %vm543_vm5 = vcmask 1041408  }
  0x17   :  { %228 = vmatpush.bf16.msra.mxu0 %v732_v0  ;;  %v730_v2 = vld [vmem:[#allocation7 + $0x28] sm:$0xff]  ;;  %v729_v3 = vld [vmem:[#allocation7 + $0x20] sm:$0xff]  ;;  %v728_v4 = vld [vmem:[#allocation7 + $0x18] sm:$0xff]  ;;  %vm566_vm9 = vcmask 1024  }
  0x18   :  { %v727_v5 = vld [vmem:[#allocation7 + $0x10] sm:$0xff]  ;;  %v726_v6 = vld [vmem:[#allocation7 + $0x8] sm:$0xff]  ;;  %v725_v7 = vld [vmem:[#allocation7] sm:$0xff] }
  0x19   :  { %v757_v8 = vld [vmem:[#allocation4] sm:$0xff]  ;;  %v758_v9 = vld [vmem:[#allocation4 + $0x8] sm:$0xff]  ;;  %v737_v18 = vld [vmem:[#allocation7 + $0x60] sm:$0xff] }
  0x1a   :  { %v740_v13 = vld [vmem:[#allocation7 + $0x78] sm:$0xff]  ;;  %v739_v14 = vld [vmem:[#allocation7 + $0x70] sm:$0xff]  ;;  %v738_v16 = vld [vmem:[#allocation7 + $0x68] sm:$0xff] }
  0x1b   :  { %229 = vmatpush.bf16.msra.mxu0 %v731_v1  ;;  %340 = vmatpush.bf16.msra.mxu2 %v740_v13  ;;  %v759_v20 = vld [vmem:[#allocation2] sm:$0xff]  ;;  %v760_v22 = vld [vmem:[#allocation2 + $0x8] sm:$0xff]  ;;  %v735_v23 = vld [vmem:[#allocation7 + $0x50] sm:$0xff] }
  0x1c   :  { %v736_v21 = vld [vmem:[#allocation7 + $0x58] sm:$0xff]  ;;  %v734_v24 = vld [vmem:[#allocation7 + $0x48] sm:$0xff]  ;;  %v733_v25 = vld [vmem:[#allocation7 + $0x40] sm:$0xff] }
  0x1d   :  { %v770_v27 = vld [vmem:[#allocation9] ss:$0 sm:$0xff]  ;;  %v756_v40 = vld [vmem:[#allocation7 + $0xf8] sm:$0xff]  ;;  %v755_v41 = vld [vmem:[#allocation7 + $0xf0] sm:$0xff] }
  0x1e   :  { %v754_v44 = vld [vmem:[#allocation7 + $0xe8] sm:$0xff]  ;;  %v753_v46 = vld [vmem:[#allocation7 + $0xe0] sm:$0xff]  ;;  %v361_v47 = vld [vmem:[#allocation6] sm:$0x1] }
  0x1f   :  { %230 = vmatpush.bf16.msra.mxu0 %v730_v2  ;;  %341 = vmatpush.bf16.msra.mxu2 %v739_v14  ;;  %v748_v48 = vld [vmem:[#allocation7 + $0xb8] sm:$0xff]  ;;  %v747_v49 = vld [vmem:[#allocation7 + $0xb0] sm:$0xff]  ;;  %v746_v50 = vld [vmem:[#allocation7 + $0xa8] sm:$0xff] }
  0x20   :  { %v745_v51 = vld [vmem:[#allocation7 + $0xa0] sm:$0xff]  ;;  %v379_v52 = vld [vmem:[#allocation6 + $0x1] sm:$0x1]  ;;  %v743_v54 = vld [vmem:[#allocation7 + $0x90] sm:$0xff] }
  0x21   :  { %v744_v53 = vld [vmem:[#allocation7 + $0x98] sm:$0xff]  ;;  %v742_v55 = vld [vmem:[#allocation7 + $0x88] sm:$0xff]  ;;  %v741_v56 = vld [vmem:[#allocation7 + $0x80] sm:$0xff] }
  0x22   :  { %v752_v57 = vld [vmem:[#allocation7 + $0xd8] sm:$0xff]  ;;  %v751_v58 = vld [vmem:[#allocation7 + $0xd0] sm:$0xff]  ;;  %v750_v59 = vld [vmem:[#allocation7 + $0xc8] sm:$0xff] }
  0x23   :  { %231 = vmatpush.bf16.msra.mxu0 %v729_v3  ;;  %342 = vmatpush.bf16.msra.mxu2 %v738_v16  ;;  %v749_v60 = vld [vmem:[#allocation7 + $0xc0] sm:$0xff] }
  0x27   :  { %232 = vmatpush.bf16.msra.mxu0 %v728_v4  ;;  %343 = vmatpush.bf16.msra.mxu2 %v737_v18 }
  0x2b   :  { %233 = vmatpush.bf16.msra.mxu0 %v727_v5  ;;  %344 = vmatpush.bf16.msra.mxu2 %v736_v21  ;;  %v771_v5 = vld [vmem:[#allocation9 + $0x1] ss:$0 sm:$0xff] }
  0x2f   :  { %234 = vmatpush.bf16.msra.mxu0 %v726_v6  ;;  %345 = vmatpush.bf16.msra.mxu2 %v735_v23 }
  0x33   :  { %235 = vmatpush.bf16.msra.mxu0 %v725_v7  ;;  %346 = vmatpush.bf16.msra.mxu2 %v734_v24 }
  0x36   :  { %236 = vmatmul.bf16.vlgmr.msra.gmra.mxu0 %v757_v8 }
  0x37   :  { %347 = vmatpush.bf16.msra.mxu2 %v733_v25 }
  0x46   :  { %241 = vmatmul.bf16.gmra.mxu0 %v758_v9 }
  0xb3   :  { %v237_v10 = vpop.f32.mrf.mxu0 }
  0xbb   :  { %v239_v11 = vpop.f32.mrf.mxu0 }
  0xbc   :  { %v251_v19 = vpack.c.bf16 %v239_v11, %v237_v10 }
  0xc3   :  { %v242_v12 = vpop.f32.mrf.mxu0 }
  0xcb   :  { %v244_v15 = vpop.f32.mrf.mxu0 }
  0xcc   :  { %v252_v17 = vpack.c.bf16 %v244_v15, %v242_v12 }
  0xce   :  { %277 = vmatpush.bf16.msra.mxu1 %v252_v17 }
  0xd2   :  { %278 = vmatpush.bf16.msra.mxu1 %v251_v19 }
  0xd5   :  { %623 = vmatmul.msk.bf16.vlgmr.msra.gmra.mxu1 %vm264_vm0, %v759_v20  ;;  %v772_v20 = vld [vmem:[#allocation9 + $0x2] ss:$0 sm:$0xff] }
  0xd6   :  { %446 = vmatpush.bf16.msrb.mxu1 %v756_v40 }
  0xda   :  { %447 = vmatpush.bf16.msrb.mxu1 %v755_v41 }
  0xde   :  { %448 = vmatpush.bf16.msrb.mxu1 %v754_v44 }
  0xe2   :  { %449 = vmatpush.bf16.msrb.mxu1 %v753_v46 }
  0xe5   :  { %624 = vmatmul.msk.bf16.gmra.mxu1 %vm264_vm0, %v760_v22 }
  0xe6   :  { %450 = vmatpush.bf16.msrb.mxu1 %v752_v57 }
  0xea   :  { %451 = vmatpush.bf16.msrb.mxu1 %v751_v58 }
  0xee   :  { %452 = vmatpush.bf16.msrb.mxu1 %v750_v59 }
  0xf2   :  { %453 = vmatpush.bf16.msrb.mxu1 %v749_v60 }
 0x152   :  { %v280_v26 = vpop.f32.mrf.mxu1 }
 0x153   :  { %v281_v29 = vadd.f32 %v770_v27, %v280_v26 }
 0x15a   :  { %v282_v28 = vpop.f32.mrf.mxu1 }
 0x15b   :  { %v283_v30 = vadd.f32 %v770_v27, %v282_v28 }
 0x15d   :  { %v290_v31 = vpack.c.bf16 %v283_v30, %v281_v29 }
 0x15f   :  { %348 = vmatmul.bf16.vlgmr.msra.gmra.mxu2 %v290_v31 }
 0x162   :  { %v285_v32 = vpop.f32.mrf.mxu1 }
 0x163   :  { %v286_v34 = vadd.f32 %v770_v27, %v285_v32 }
 0x16a   :  { %v287_v33 = vpop.f32.mrf.mxu1 }
 0x16b   :  { %v288_v35 = vadd.f32 %v770_v27, %v287_v33 }
 0x16d   :  { %v291_v36 = vpack.c.bf16 %v288_v35, %v286_v34 }
 0x16f   :  { %353 = vmatmul.bf16.gmra.mxu2 %v291_v36 }
 0x1e2   :  { %v349_v37 = vpop.f32.mrf.mxu2 }
 0x1ea   :  { %v351_v38 = vpop.f32.mrf.mxu2 }
 0x1eb   :  { %v359_v45 = vpack.c.bf16 %v351_v38, %v349_v37 }
 0x1f2   :  { %v354_v39 = vpop.f32.mrf.mxu2 }
 0x1fa   :  { %v356_v42 = vpop.f32.mrf.mxu2 }
 0x1fb   :  { %v360_v43 = vpack.c.bf16 %v356_v42, %v354_v39 }
 0x1fd   :  { %371 = vmatpush.bf16.msra.mxu3 %v360_v43 }
 0x201   :  { %372 = vmatpush.bf16.msra.mxu3 %v359_v45 }
 0x204   :  { %657 = vmatmul.msk.bf16.vlgmr.msra.gmra.mxu3 %vm264_vm0, %v361_v47 }
 0x205   :  { %389 = vmatpush.bf16.msrb.mxu3 %v360_v43 }
 0x209   :  { %390 = vmatpush.bf16.msrb.mxu3 %v359_v45 }
 0x20d   :  { %507 = vmatpush.bf16.msra.mxu3 %v748_v48 }
 0x211   :  { %508 = vmatpush.bf16.msra.mxu3 %v747_v49 }
 0x214   :  { %658 = vmatmul.msk.bf16.vlgmr.msrb.gmra.mxu3 %vm264_vm0, %v379_v52 }
 0x215   :  { %509 = vmatpush.bf16.msra.mxu3 %v746_v50 }
 0x219   :  { %510 = vmatpush.bf16.msra.mxu3 %v745_v51 }
 0x21d   :  { %511 = vmatpush.bf16.msra.mxu3 %v744_v53 }
 0x221   :  { %512 = vmatpush.bf16.msra.mxu3 %v743_v54 }
 0x225   :  { %513 = vmatpush.bf16.msra.mxu3 %v742_v55 }
 0x229   :  { %514 = vmatpush.bf16.msra.mxu3 %v741_v56 }
 0x287   :  { %v374_v61 = vpop.f32.mrf.mxu3 }
 0x288   :  { %v396_v62 = vpack.c.bf16 %v374_v61, %v374_v61 }
 0x28a   :  { %515 = vmatmul.bf16.vlgmr.msra.gmra.mxu3 %v396_v62 }
 0x28f   :  { %v376_v63 = vpop.f32.mrf.mxu3 }
 0x297   :  { %v392_v0 = vpop.f32.mrf.mxu3 }
 0x298   :  { %v397_v1 = vpack.c.bf16 %v392_v0, %v392_v0 }
 0x29a   :  { %454 = vmatmul.bf16.vlgmr.msrb.gmra.mxu1 %v397_v1 }
 0x29f   :  { %v394_v2 = vpop.f32.mrf.mxu3 }
 0x30d   :  { %v516_v3 = vpop.f32.mrf.mxu3 }
 0x315   :  { %v518_v4 = vpop.f32.mrf.mxu3 }
 0x317   :  { %v455_v6 = vpop.f32.mrf.mxu1 }
 0x318   :  { %v517_v7 = vadd.f32 %v516_v3, %v455_v6 }
 0x31a   :  { %v521_v8 = vadd.f32 %v771_v5, %v517_v7 }
 0x31c   :  { %v723_v9 = vmul.f32 -1.442695, %v521_v8 }
 0x31e   :  { %773 = vpow2.f32 %v723_v9 }
 0x31f   :  { %v457_v10 = vpop.f32.mrf.mxu1 }
 0x324   :  { %v774_v11 = vpop.eup %773 }
 0x325   :  { %v525_v12 = vadd.f32 1.0, %v774_v11 }
 0x327   :  { %775 = vrcp.f32 %v525_v12  ;;  %v537_v16 = vand.u32 2147483648, %v525_v12  ;;  %v535_v18 = vand.u32 2147483647, %v525_v12  ;;  %vm531_vm2 = vweird.f32 %v525_v12 }
 0x329   :  { %v538_v21 = vor.u32 1.1754944e-38, %v537_v16  ;;  %vm536_vm4 = vcmp.eq.f32.partialorder %v535_v18, 8.507059e+37 }
 0x32d   :  { %v776_v13 = vpop.eup %775 }
 0x32e   :  { %v527_v14 = vmul.f32 %v776_v13, %v525_v12  ;;  %vm532_vm1 = vweird.f32 %v776_v13 }
 0x32f   :  { %vm533_vm3 = vmor %vm531_vm2, %vm532_vm1 }
 0x330   :  { %v528_v15 = vsub.f32 1.0, %v527_v14 }
 0x332   :  { %v529_v17 = vmul.f32 %v776_v13, %v528_v15 }
 0x334   :  { %v530_v19 = vadd.f32 %v776_v13, %v529_v17 }
 0x336   :  { %v534_v22 = vsel %vm533_vm3, %v776_v13, %v530_v19 }
 0x337   :  { %v539_v23 = vsel %vm536_vm4, %v538_v21, %v534_v22 }
 0x338   :  { %v542_v24 = vmul.f32 %v772_v20, %v539_v23 }
 0x33a   :  { %v544_v25 = vsel %vm543_vm5, %v542_v24, 0.0 }
 0x33b   :  { %545 = vadd.xlane.f32.xlu0 %v544_v25 }
 0x3ae   :  { %v546_v26 = vpop.xlane.xlu0 %545 }
 0x3af   :  { %v724_v27 = vmul.f32 -1.442695, %v546_v26 }
 0x3b1   :  { %777 = vpow2.f32 %v724_v27 }
 0x3b7   :  { %v778_v28 = vpop.eup %777 }
 0x3b8   :  { %v550_v29 = vadd.f32 1.0, %v778_v28 }
 0x3ba   :  { %779 = vrcp.f32 %v550_v29  ;;  %v562_v33 = vand.u32 2147483648, %v550_v29  ;;  %v560_v35 = vand.u32 2147483647, %v550_v29  ;;  %vm556_vm7 = vweird.f32 %v550_v29 }
 0x3bc   :  { %v563_v37 = vor.u32 1.1754944e-38, %v562_v33  ;;  %vm561_vm10 = vcmp.eq.f32.partialorder %v560_v35, 8.507059e+37 }
 0x3c0   :  { %v780_v30 = vpop.eup %779 }
 0x3c1   :  { %v552_v31 = vmul.f32 %v780_v30, %v550_v29  ;;  %vm557_vm6 = vweird.f32 %v780_v30 }
 0x3c2   :  { %vm558_vm8 = vmor %vm556_vm7, %vm557_vm6 }
 0x3c3   :  { %v553_v32 = vsub.f32 1.0, %v552_v31 }
 0x3c5   :  { %v554_v34 = vmul.f32 %v780_v30, %v553_v32 }
 0x3c7   :  { %v555_v36 = vadd.f32 %v780_v30, %v554_v34 }
 0x3c9   :  { %v559_v38 = vsel %vm558_vm8, %v780_v30, %v555_v36 }
 0x3ca   :  { %v564_v39 = vsel %vm561_vm10, %v563_v37, %v559_v38 }
 0x3cb   :  { %567 = vst.msk [vmem:[%s973_s5] sm:$0x3] %vm566_vm9, %v564_v39 }
 0x3cc   :  { %572 = vsyncpa [#allocation3], 1 }
 0x3cd   :  { %573 = vsyncpa [#allocation5], 1 }
 0x3ce   :  { %574 = vsyncpa [#allocation8], 1 }

</bundles_post_ra>
